<compile_context>
chip_gen: v7x
topology: tpu7x:2x2x1
jax: 0.10.0
libtpu: 0.0.40
codegen_flags: <defaults>
</compile_context>

<pallas_src>
import functools

import jax
import jax.numpy as jnp
from jax import lax
from jax.experimental import pallas as pl
from jax.experimental.pallas import tpu as pltpu


def _swiglu_kernel(x_ref, w_ref, b_ref, o_ref):
    """Compute one (tm, tn) output tile of SwiGLU.

    x_ref: (tm, D)      activation row tile (full contraction dim)
    w_ref: (2, tn, D)   [0]=gate rows, [1]=value rows of the (2D, D) Linear
                        weight, PyTorch layout (NOT transposed).
    b_ref: (2, tn)      [0]=gate bias slice, [1]=value bias slice
    o_ref: (tm, tn)
    """
    x = x_ref[...]
    # Contract x's last axis with w's last axis  ==  x @ W.T  (PyTorch Linear).
    contract = (((1,), (1,)), ((), ()))
    gate = lax.dot_general(x, w_ref[0], contract,
                           preferred_element_type=jnp.float32) + b_ref[0:1, :]
    val = lax.dot_general(x, w_ref[1], contract,
                          preferred_element_type=jnp.float32) + b_ref[1:2, :]
    # SiLU gate + value, all in f32, single cast on the store.
    o_ref[...] = (gate * jax.nn.sigmoid(gate) + val).astype(o_ref.dtype)


def _round_up(a, b):
    return (a + b - 1) // b * b


def _pick_tn(d, desired):
    """Largest lane-dense (multiple-of-128) tile <= desired that divides d."""
    if d % 128 != 0:
        return d  # small / odd dims: single full-width tile (lane-sparse but legal)
    tn = (min(desired, d) // 128) * 128
    while d % tn:
        tn -= 128
    return tn


@functools.partial(jax.jit, static_argnames=("block_m", "block_n"))
def swiglu(x, weight, bias, *, block_m=256, block_n=512):
    """SwiGLU forward.

    Args:
      x:      (..., dim_in)
      weight: (2*dim_in, dim_in)   -- PyTorch nn.Linear layout (not transposed)
      bias:   (2*dim_in,)
    Returns:
      (..., dim_in)
    """
    d = x.shape[-1]
    lead = x.shape[:-1]
    m = 1
    for s in lead:
        m *= s
    x2d = x.reshape(m, d)

    # Free bitcast-reshapes (row-major layout unchanged) -- no HBM copies.
    w3 = weight.reshape(2, d, d)   # [0]=gate rows, [1]=value rows
    b2 = bias.reshape(2, d)

    # --- tile selection -------------------------------------------------
    dtype_bytes = max(jnp.dtype(x.dtype).itemsize, jnp.dtype(weight.dtype).itemsize)
    sub = max(8, 32 // dtype_bytes)           # sublane packing: 8 (f32) / 16 (bf16)
    tm = min(block_m, _round_up(m, sub))      # big row tile, shrunk for tiny M
    tn = _pick_tn(d, block_n)                 # lane-dense output column tile

    m_pad = _round_up(m, tm)
    if m_pad != m:
        x2d = jnp.pad(x2d, ((0, m_pad - m), (0, 0)))

    grid = (d // tn, m_pad // tm)             # N outer (weight strip reused), M inner

    # --- VMEM budget (double-buffered x / W / out tiles + bias + margin) --
    vmem_need = 2 * dtype_bytes * (tm * d + 2 * tn * d + tm * tn) \
        + 2 * tn * dtype_bytes + 2 * tm * tn * 4
    vmem_limit = int(min(max(vmem_need + (8 << 20), 32 << 20), 112 << 20))

    out2d = pl.pallas_call(
        _swiglu_kernel,
        out_shape=jax.ShapeDtypeStruct((m_pad, d), x.dtype),
        grid_spec=pltpu.PrefetchScalarGridSpec(
            num_scalar_prefetch=0,
            grid=grid,
            in_specs=[
                pl.BlockSpec((tm, d), lambda j, i: (i, 0)),       # x row tile
                pl.BlockSpec((2, tn, d), lambda j, i: (0, j, 0)),  # gate+val weight strip
                pl.BlockSpec((2, tn), lambda j, i: (0, j)),        # gate+val bias slice
            ],
            out_specs=pl.BlockSpec((tm, tn), lambda j, i: (i, j)),
        ),
        compiler_params=pltpu.CompilerParams(
            dimension_semantics=("parallel", "parallel"),
            vmem_limit_bytes=vmem_limit),
    )(x2d, w3, b2)

    if m_pad != m:
        out2d = out2d[:m]
    return out2d.reshape(*lead, d)


def swiglu_ref(x, weight, bias):
    """Pure-JAX reference matching the PyTorch forward exactly."""
    dim_in = weight.shape[1]
    y = x @ weight.T + bias
    return jax.nn.silu(y[..., :dim_in]) + y[..., dim_in:]


if __name__ == "__main__":
    batch, seq, dim_in = 2, 8, 32

    key = jax.random.PRNGKey(0)
    kx, kw, kb = jax.random.split(key, 3)

    # Shapes from nn.Linear(dim_in, 2*dim_in).
    x = jax.random.normal(kx, (batch, seq, dim_in), dtype=jnp.float32)
    weight = jax.random.normal(kw, (2 * dim_in, dim_in), dtype=jnp.float32) * 0.1
    bias = jax.random.normal(kb, (2 * dim_in,), dtype=jnp.float32) * 0.1

    out = swiglu(x, weight, bias)
    jax.block_until_ready(out)

    ref = swiglu_ref(x, weight, bias)
    assert out.shape == (batch, seq, dim_in), out.shape
    assert jnp.allclose(out, ref, atol=1e-5, rtol=1e-5), float(
        jnp.max(jnp.abs(out - ref)))

    # Also exercise a ragged-M / tiled-N path (M not a multiple of the tile,
    # dim_in a multiple of 128) to validate padding + N-tiling.
    x2 = jax.random.normal(kx, (3, 37, 256), dtype=jnp.float32)
    w2 = jax.random.normal(kw, (512, 256), dtype=jnp.float32) * 0.05
    b2 = jax.random.normal(kb, (512,), dtype=jnp.float32) * 0.05
    out2 = swiglu(x2, w2, b2, block_m=64, block_n=128)
    jax.block_until_ready(out2)
    assert jnp.allclose(out2, swiglu_ref(x2, w2, b2), atol=1e-4, rtol=1e-4)

    print("KERNEL_OK")
</pallas_src>

<mosaic_0001>
module attributes {stable_mosaic.version = 11 : i64} {
  func.func @_swiglu_kernel(%arg0: i32, %arg1: i32, %arg2: memref<16x32xf32, #tpu.memory_space<vmem>>, %arg3: memref<2x32x32xf32, #tpu.memory_space<vmem>>, %arg4: memref<2x32xf32, #tpu.memory_space<vmem>>, %arg5: memref<16x32xf32, #tpu.memory_space<vmem>>) attributes {dimension_semantics = [#tpu.dimension_semantics<parallel>, #tpu.dimension_semantics<parallel>], iteration_bounds = array<i64: 1, 1>, scalar_prefetch = 0 : i64, scratch_operands = 0 : i64, tpu.core_type = #tpu.core_type<tc>, window_params = [{transform_indices = @transform_0, window_bounds = array<i64: 16, 32>}, {transform_indices = @transform_1, window_bounds = array<i64: 2, 32, 32>}, {transform_indices = @transform_2, window_bounds = array<i64: 2, 32>}, {transform_indices = @transform_3, window_bounds = array<i64: 16, 32>}]} {
    %c0 = arith.constant 0 : index
    %c0_0 = arith.constant 0 : index
    %0 = vector.load %arg2[%c0, %c0_0] : memref<16x32xf32, #tpu.memory_space<vmem>>, vector<16x32xf32>
    %c0_1 = arith.constant 0 : index
    %c0_2 = arith.constant 0 : index
    %c0_3 = arith.constant 0 : index
    %1 = vector.load %arg3[%c0_1, %c0_2, %c0_3] : memref<2x32x32xf32, #tpu.memory_space<vmem>>, vector<1x32x32xf32>
    %2 = vector.shape_cast %1 : vector<1x32x32xf32> to vector<32x32xf32>
    %cst = arith.constant dense<0.000000e+00> : vector<16x32xf32>
    %3 = tpu.matmul %0, %2, %cst {dimension_numbers = #tpu.dot_dimension_numbers<[1], [1], [0], [0], [0, 0, 1, 0], [], []>} : vector<16x32xf32>, vector<32x32xf32>, vector<16x32xf32> -> vector<16x32xf32>
    %c0_4 = arith.constant 0 : index
    %c0_5 = arith.constant 0 : index
    %4 = vector.load %arg4[%c0_4, %c0_5] : memref<2x32xf32, #tpu.memory_space<vmem>>, vector<1x32xf32>
    %5 = vector.broadcast %4 : vector<1x32xf32> to vector<16x32xf32>
    %6 = arith.addf %3, %5 : vector<16x32xf32>
    %c1 = arith.constant 1 : index
    %c0_6 = arith.constant 0 : index
    %c0_7 = arith.constant 0 : index
    %7 = vector.load %arg3[%c1, %c0_6, %c0_7] : memref<2x32x32xf32, #tpu.memory_space<vmem>>, vector<1x32x32xf32>
    %8 = vector.shape_cast %7 : vector<1x32x32xf32> to vector<32x32xf32>
    %cst_8 = arith.constant dense<0.000000e+00> : vector<16x32xf32>
    %9 = tpu.matmul %0, %8, %cst_8 {dimension_numbers = #tpu.dot_dimension_numbers<[1], [1], [0], [0], [0, 0, 1, 0], [], []>} : vector<16x32xf32>, vector<32x32xf32>, vector<16x32xf32> -> vector<16x32xf32>
    %c1_9 = arith.constant 1 : index
    %c0_10 = arith.constant 0 : index
    %10 = vector.load %arg4[%c1_9, %c0_10] : memref<2x32xf32, #tpu.memory_space<vmem>>, vector<1x32xf32>
    %11 = vector.broadcast %10 : vector<1x32xf32> to vector<16x32xf32>
    %12 = arith.addf %9, %11 : vector<16x32xf32>
    %13 = arith.negf %6 : vector<16x32xf32>
    %14 = math.exp %13 : vector<16x32xf32>
    %cst_11 = arith.constant 1.000000e+00 : f32
    %15 = vector.broadcast %cst_11 : f32 to vector<16x32xf32>
    %16 = arith.addf %15, %14 : vector<16x32xf32>
    %17 = arith.divf %15, %16 : vector<16x32xf32>
    %18 = arith.mulf %6, %17 : vector<16x32xf32>
    %19 = arith.addf %18, %12 : vector<16x32xf32>
    %c0_12 = arith.constant 0 : index
    %c0_13 = arith.constant 0 : index
    %20 = vector.load %arg5[%c0_12, %c0_13] : memref<16x32xf32, #tpu.memory_space<vmem>>, vector<16x32xf32>
    tpu.vector_store %arg5[%c0_12, %c0_13], %19 {strides = array<i32>} : memref<16x32xf32, #tpu.memory_space<vmem>>, vector<16x32xf32>,
    return
  }
  func.func @transform_0(%arg0: i32, %arg1: i32) -> (i32, i32) {
    %c0_i32 = arith.constant 0 : i32
    %c0_i32_0 = arith.constant 0 : i32
    return %arg1, %c0_i32 : i32, i32
  }
  func.func @transform_1(%arg0: i32, %arg1: i32) -> (i32, i32, i32) {
    %c0_i32 = arith.constant 0 : i32
    %c0_i32_0 = arith.constant 0 : i32
    %c0_i32_1 = arith.constant 0 : i32
    return %c0_i32, %arg0, %c0_i32_0 : i32, i32, i32
  }
  func.func @transform_2(%arg0: i32, %arg1: i32) -> (i32, i32) {
    %c0_i32 = arith.constant 0 : i32
    %c0_i32_0 = arith.constant 0 : i32
    return %c0_i32, %arg0 : i32, i32
  }
  func.func @transform_3(%arg0: i32, %arg1: i32) -> (i32, i32) {
    %c0_i32 = arith.constant 0 : i32
    return %arg1, %arg0 : i32, i32
  }
}

</mosaic_0001>

<bundles_post_ra>
// kernel: swiglu.1
= control target key start
LH: loop header
LB: loop body
LE: loop exit
PB: predicated region body
PF: predicated region fallthrough
CT: control target
= control target key end

     0   :  { %vm26_vm0 = vcmask 261120   ;;  %s463_s0 = inlined_call_operand.vmem [shape: f32[16,32], index: 0, kind: input, shape index: {}]   ;;  %s464_s1 = inlined_call_operand.vmem [shape: f32[2,32,32], index: 1, kind: input, shape index: {}]   ;;  %s465_s2 = inlined_call_operand.vmem [shape: f32[2,32], index: 2, kind: input, shape index: {}]   ;;  %s466_s3 = inlined_call_operand.hbm [shape: f32[16,32], index: 3, kind: output, shape index: {}]  }
   0x1   :  { %v17_v0 = vld [vmem:[%s464_s1] sm:$0xff]  ;;  %v18_v1 = vld [vmem:[%s464_s1 + $0x8] sm:$0xff]  ;;  %v19_v2 = vld [vmem:[%s464_s1 + $0x10] sm:$0xff] }
   0x2   :  { %v305_v3 = vpack.c.bf16 %v18_v1, %v17_v0  ;;  %vm398_vm1 = vmpackc.low %vm26_vm0, %vm26_vm0  ;;  %v20_v5 = vld [vmem:[%s464_s1 + $0x18] sm:$0xff]  ;;  %v15_v6 = vld [vmem:[%s463_s0] sm:$0xff] }
   0x3   :  { %v311_v7 = vpack.c.bf16 %v20_v5, %v19_v2  ;;  %291 = vmatprep.mubr.msk.f32.mxu0 %vm26_vm0, %v15_v6  ;;  %v258_v8 = vld [vmem:[%s464_s1 + $0x20] sm:$0xff]  ;;  %v259_v9 = vld [vmem:[%s464_s1 + $0x28] sm:$0xff]  ;;  %302 = vmatprep.mubr.msk.f32.mxu1 %vm26_vm0, %v15_v6  ;;  %v260_v11 = vld [vmem:[%s464_s1 + $0x30] sm:$0xff] }
   0x4   :  { %307 = vmatprep.subr.msk.bf16.mxu0 %vm398_vm1, %v305_v3  ;;  %v317_v10 = vpack.c.bf16 %v259_v9, %v258_v8  ;;  %v261_v12 = vld [vmem:[%s464_s1 + $0x38] sm:$0xff] }
   0x5   :  { %8 = vsyncpa [#allocation3], 0  ;;  %310 = vmatpush3.bf16.xpose.msk.msra.mxu0 %vm398_vm1, %v305_v3  ;;  %v323_v13 = vpack.c.bf16 %v261_v12, %v260_v11  ;;  %v16_v14 = vld [vmem:[%s463_s0 + $0x8] sm:$0xff]  ;;  %v251_v15 = vld [vmem:[%s465_s2] ss:$0 sm:$0xff]  ;;  %s364_s7 = smov [#allocation2]  }
   0x6   :  { %313 = vmatprep.subr.msk.bf16.mxu0 %vm398_vm1, %v311_v7  ;;  %319 = vmatprep.subr.msk.bf16.mxu1 %vm398_vm1, %v317_v10  ;;  %v262_v28 = vld [vmem:[%s465_s2 + $0x1] ss:$0 sm:$0xff]  ;;  %s240_s8 = sshll.u32 %s364_s7, 4  ;;  %s241_s8 = int_to_ptr.vmem [resolvable:$true] %s240_s8 }
   0x7   :  { %322 = vmatpush3.bf16.xpose.msk.msra.mxu1 %vm398_vm1, %v317_v10  ;;  %s340_s9 = scalar_lea.vmem %s241_s8, 256  ;;  %p345_p1 = scmp.lt.s32.totalorder %s241_s8, %s241_s8 }
   0x8   :  { %325 = vmatprep.subr.msk.bf16.mxu1 %vm398_vm1, %v323_v13  ;;  %p341_p0 = scmp.ne.s32.totalorder %s241_s8, %s340_s9  ;;  %p346_p2 = scmp.lt.s32.totalorder %s340_s9, %s340_s9 }
   0xa   :  { %p347_p3 = por %p346_p2, %p345_p1 }
   0xc   :  { %p348_p4 = pnand %p347_p3, %p341_p0 }
   0xd   :  { %316 = vmatpush3.bf16.xpose.msk.msra.mxu0 %vm398_vm1, %v311_v7 }
   0xf   :  { %328 = vmatpush3.bf16.xpose.msk.msra.mxu1 %vm398_vm1, %v323_v13 }
  0x14   :  { %292 = vmatmul.mubr.msk.f32.vlgmr.msra.gmra.mrb[0].mxu0 %vm26_vm0, %v16_v14 }
  0x16   :  { %303 = vmatmul.mubr.msk.f32.vlgmr.msra.gmra.mrb[0].mxu1 %vm26_vm0, %v16_v14 }
  0xe7   :  { %v293_v16 = vpop.f32.mrb[0].mxu0 }
  0xe8   :  { %v117_v17 = vadd.f32 %v293_v16, %v251_v15  ;;  %v111_v18 = vpop.f32.mrb[1].mxu0 }
  0xe9   :  { %v112_v19 = vadd.f32 %v251_v15, %v111_v18  ;;  %v304_v20 = vpop.f32.mrb[0].mxu1 }
  0xea   :  { %v270_v21 = vmul.f32 -1.442695, %v117_v17  ;;  %v208_v22 = vpop.f32.mrb[1].mxu1  ;;  %v214_v29 = vadd.f32 %v304_v20, %v262_v28 }
  0xeb   :  { %v269_v23 = vmul.f32 -1.442695, %v112_v19  ;;  %v209_v31 = vadd.f32 %v262_v28, %v208_v22 }
  0xec   :  { %332 = vpow2.f32 %v270_v21 }
  0xed   :  { %334 = vpow2.f32 %v269_v23 }
  0xf6   :  { %v333_v24 = vpop.eup %332 }
  0xf7   :  { %v335_v25 = vpop.eup %334  ;;  %v224_v26 = vadd.f32 1.0, %v333_v24 }
  0xf8   :  { %v223_v27 = vadd.f32 1.0, %v335_v25 }
  0xf9   :  { %336 = vrcp.f32 %v224_v26 }
  0xfa   :  { %338 = vrcp.f32 %v223_v27 }
 0x103   :  { %v337_v30 = vpop.eup %336 }
 0x104   :  { %v339_v32 = vpop.eup %338  ;;  %v230_v33 = vmul.f32 %v337_v30, %v117_v17 }
 0x105   :  { %v229_v34 = vmul.f32 %v339_v32, %v112_v19 }
 0x106   :  { %v232_v35 = vadd.f32 %v230_v33, %v214_v29 }
 0x107   :  { %v231_v36 = vadd.f32 %v229_v34, %v209_v31 }
 0x108   :  { %234 = vst.msk [vmem:[#allocation2 + $0x8] sm:$0xff] %vm26_vm0, %v232_v35 }
 0x109   :  { %233 = vst.msk [vmem:[#allocation2] sm:$0xff] %vm26_vm0, %v231_v36 }
 0x10a   :  { %351 = shalt.err (!%p348_p4)
}
 0x10b   :  { %s352_s11 = scalar_lea.hbm %s466_s3, 256 }
 0x10c   :  { %p353_p5 = scmp.ne.s32.totalorder %s466_s3, %s352_s11  ;;  %p356_p6 = scmp.lt.u32.totalorder %s352_s11, %s466_s3 }
 0x10e   :  { %p358_p7 = pnand %p356_p6, %p353_p5 }
 0x110   :  { %361 = shalt.err (!%p358_p7)
}
 0x111   :  { %s365_s16 = smov 128   ;;  %s366_s17 = smov 8  }
 0x112   :  { %246 = dma.vmem_to_hbm [thread:$0]  %s241_s8, 256, %s466_s3, [#allocation3], %s365_s16, %s365_s16, %s366_s17  }
 0x113   :  { %362 = dma.done.wait [#allocation3], 256  }
 0x114   :  { %363 = vsyncadd [#allocation3], 4294967040 }
 0x115   :  { %250 = vsyncpa [#allocation3], 1 }

</bundles_post_ra>
